<compile_context>
chip_gen: v6e
topology: v6e:2x2x1
jax: 0.10.0
libtpu: 0.0.40
codegen_flags: <defaults>
</compile_context>

<pallas_src>
import functools
import math

import jax
import jax.numpy as jnp
from jax.experimental import pallas as pl
from jax.experimental.pallas import tpu as pltpu


# ----------------------------------------------------------------------------
# Parameter setup (plain JAX glue): build the sinusoidal pe buffer.
# ----------------------------------------------------------------------------
def make_positional_encoding(d_model: int, max_len: int) -> jnp.ndarray:
    position = jnp.arange(max_len, dtype=jnp.float32)[:, None]              # [L, 1]
    div_term = jnp.exp(
        jnp.arange(0, d_model, 2, dtype=jnp.float32)
        * (-math.log(10000.0) / d_model)
    )                                                                        # [D/2]
    pe = jnp.zeros((max_len, d_model), dtype=jnp.float32)
    pe = pe.at[:, 0::2].set(jnp.sin(position * div_term))
    pe = pe.at[:, 1::2].set(jnp.cos(position * div_term))
    # matches torch: pe.unsqueeze(0).transpose(0, 1) -> [max_len, 1, d_model]
    return pe[:, None, :]


# ----------------------------------------------------------------------------
# Kernel helpers
# ----------------------------------------------------------------------------
def _broadcast_pe_block(pe_ref, x, *, block_rows: int, batch: int):
    """Slice the VMEM-resident pe to this block's rows, broadcast over batch."""
    row0 = pl.multiple_of(pl.program_id(0) * block_rows, block_rows)
    pe_blk = pe_ref[pl.ds(row0, block_rows)]        # [rows, D] or [rows, 1, D]
    if x.ndim == 2:                                 # lane-packed [rows, B*D]
        pe_blk = jnp.tile(pe_blk, (1, batch))       # repeat pattern along lanes
    # 3-D case: [rows, 1, D] broadcasts over the batch sublanes in the add.
    return pe_blk.astype(x.dtype)


def _apply_inverted_dropout(y, bits_i31, p: float):
    """bits_i31: uniform int32 in [0, 2^31). Keep iff bits >= p*2^31."""
    keep = bits_i31 >= jnp.int32(int(p * float(1 << 31)))
    scale = jnp.asarray(1.0 / (1.0 - p), dtype=y.dtype)
    return jnp.where(keep, y * scale, jnp.zeros_like(y))


# ----------------------------------------------------------------------------
# Kernels (mem-bound elementwise: broadcast add + optional inverted dropout).
# ----------------------------------------------------------------------------
def _pe_add_kernel(x_ref, pe_ref, o_ref, *, block_rows: int, batch: int):
    x = x_ref[...]
    pe_b = _broadcast_pe_block(pe_ref, x, block_rows=block_rows, batch=batch)
    o_ref[...] = (x + pe_b).astype(o_ref.dtype)


def _pe_add_dropout_hw_kernel(x_ref, pe_ref, seed_ref, o_ref, *,
                              p: float, block_rows: int, batch: int):
    """TPU path: hardware PRNG, integer threshold compare (no float convert)."""
    x = x_ref[...]
    y = x + _broadcast_pe_block(pe_ref, x, block_rows=block_rows, batch=batch)
    # One independent stream per grid block (reproducible for a fixed seed).
    pltpu.prng_seed(seed_ref[0] + pl.program_id(0))
    bits = pltpu.prng_random_bits(o_ref.shape)
    bits = jnp.bitwise_and(bits, 0x7FFFFFFF).astype(jnp.int32)   # [0, 2^31)
    o_ref[...] = _apply_inverted_dropout(y, bits, p).astype(o_ref.dtype)


def _pe_add_dropout_hash_kernel(x_ref, pe_ref, seed_ref, o_ref, *,
                                p: float, block_rows: int, batch: int,
                                row_size: int):
    """Portable fallback (interpret / non-TPU): lowbias32 counter hash."""
    x = x_ref[...]
    y = x + _broadcast_pe_block(pe_ref, x, block_rows=block_rows, batch=batch)
    shape = o_ref.shape
    row0 = pl.program_id(0) * block_rows
    ids = (jax.lax.broadcasted_iota(jnp.int32, shape, 0) + row0).astype(jnp.uint32)
    ids = ids * jnp.uint32(row_size)
    if len(shape) == 2:
        ids = ids + jax.lax.broadcasted_iota(jnp.int32, shape, 1).astype(jnp.uint32)
    else:
        ids = ids + (jax.lax.broadcasted_iota(jnp.int32, shape, 1).astype(jnp.uint32)
                     * jnp.uint32(shape[2])
                     + jax.lax.broadcasted_iota(jnp.int32, shape, 2).astype(jnp.uint32))
    h = ids + seed_ref[0].astype(jnp.uint32) * jnp.uint32(0x9E3779B9)
    h = h ^ (h >> jnp.uint32(16))
    h = h * jnp.uint32(0x7FEB352D)
    h = h ^ (h >> jnp.uint32(15))
    h = h * jnp.uint32(0x846CA68B)
    h = h ^ (h >> jnp.uint32(16))
    bits = jnp.bitwise_and(h, jnp.uint32(0x7FFFFFFF)).astype(jnp.int32)
    o_ref[...] = _apply_inverted_dropout(y, bits, p).astype(o_ref.dtype)


# ----------------------------------------------------------------------------
# Wrapper
# ----------------------------------------------------------------------------
def _pick_block_rows(n_rows: int, row_bytes: int, itemsize: int,
                     target_block_bytes: int = 6 * 1024 * 1024) -> int:
    """Largest row-block (dtype-aligned sublane multiple, or full extent) ~6 MiB."""
    sublane = max(8, 32 // max(itemsize, 1))       # f32: 8, bf16: 16, int8: 32
    if n_rows * row_bytes <= target_block_bytes:
        return n_rows
    rows = (target_block_bytes // max(row_bytes, 1)) // sublane * sublane
    return int(min(max(rows, sublane), n_rows))


def positional_encoding_forward(x, pe, *, p: float = 0.1,
                                training: bool = False, seed: int = 0):
    """x: [seq_len, batch, d_model]; pe: [max_len, 1, d_model].

    Returns dropout(x + pe[:seq_len], p).  The caller should supply a fresh
    `seed` every training step (same seed => same mask).
    """
    assert 0.0 <= p <= 1.0, "dropout prob must be in [0, 1]"
    seq_len, batch, d_model = x.shape
    itemsize = jnp.dtype(x.dtype).itemsize
    row_elems = batch * d_model

    block_s = _pick_block_rows(seq_len, row_elems * itemsize, itemsize)
    n_blocks = pl.cdiv(seq_len, block_s)
    grid = (n_blocks,)
    s_pad = n_blocks * block_s

    # pe is tiny.  Slice to seq_len, cast to x.dtype, pad rows to the grid
    # extent (so the in-kernel pl.ds slice never goes out of bounds), and keep
    # it fully VMEM-resident via a constant index_map.  No wrapper-side,
    # x-sized jnp.tile and no per-step pe DMA.
    pe_sd = pe[:seq_len, 0, :].astype(x.dtype)                           # [S, D]
    if s_pad > seq_len:
        pe_sd = jnp.pad(pe_sd, ((0, s_pad - seq_len), (0, 0)))

    # Layout: keep the stored output lane-dense.
    #  * d_model % 128 == 0 -> keep [S, B, D]; pe resident as [S_pad, 1, D].
    #  * otherwise -> collapse batch into the lane dim ([S, B*D]); pe resident
    #    as [S_pad, D] and broadcast across batch inside the kernel.
    lane_pack = (d_model % 128) != 0
    if lane_pack:
        cols = row_elems
        x_in = x.reshape(seq_len, cols)
        pe_in = pe_sd                                                    # [S_pad, D]
        x_spec = pl.BlockSpec((block_s, cols), lambda i: (i, 0))
        pe_spec = pl.BlockSpec((s_pad, d_model), lambda i: (0, 0))
        out_spec = pl.BlockSpec((block_s, cols), lambda i: (i, 0))
    else:
        x_in = x
        pe_in = pe_sd[:, None, :]                                        # [S_pad, 1, D]
        x_spec = pl.BlockSpec((block_s, batch, d_model), lambda i: (i, 0, 0))
        pe_spec = pl.BlockSpec((s_pad, 1, d_model), lambda i: (0, 0, 0))
        out_spec = pl.BlockSpec((block_s, batch, d_model), lambda i: (i, 0, 0))

    out_shape = jax.ShapeDtypeStruct(x_in.shape, x.dtype)

    # "parallel" shards the seq grid across v7x's two TensorCores (no-op on
    # v5e/v6e).  ~6 MiB blocks x 2 streams x double-buffer + resident pe fits
    # comfortably under the 48 MiB scoped-VMEM limit on all generations.
    compiler_params = pltpu.CompilerParams(
        dimension_semantics=("parallel",),
        vmem_limit_bytes=48 * 1024 * 1024,
    )
    # TODO(synk): pass input_output_aliases={0: 0} when the caller donates x
    # (avoids a second full-size HBM buffer); omitted for the eager demo.

    if (not training) or p <= 0.0:
        kernel = functools.partial(_pe_add_kernel, block_rows=block_s, batch=batch)
        out = pl.pallas_call(
            kernel,
            out_shape=out_shape,
            grid=grid,
            in_specs=[x_spec, pe_spec],
            out_specs=out_spec,
            compiler_params=compiler_params,
        )(x_in, pe_in)
    elif p >= 1.0:
        out = jnp.zeros_like(x_in)            # nn.Dropout(p=1) zeroes everything
    else:
        seed_arr = jnp.asarray([seed], dtype=jnp.int32)
        if jax.default_backend() == "tpu":
            kernel = functools.partial(
                _pe_add_dropout_hw_kernel,
                p=float(p), block_rows=block_s, batch=batch)
        else:
            kernel = functools.partial(
                _pe_add_dropout_hash_kernel,
                p=float(p), block_rows=block_s, batch=batch, row_size=row_elems)
        out = pl.pallas_call(
            kernel,
            out_shape=out_shape,
            grid=grid,
            in_specs=[x_spec, pe_spec,
                      pl.BlockSpec(memory_space=pltpu.MemorySpace.SMEM)],
            out_specs=out_spec,
            compiler_params=compiler_params,
        )(x_in, pe_in, seed_arr)

    return out.reshape(seq_len, batch, d_model)


# ----------------------------------------------------------------------------
# Main
# ----------------------------------------------------------------------------
if __name__ == "__main__":
    dropout_p = 0.1

    # ---- Config 1: small d_model -> lane-packed [S, B*D] path --------------
    S, B, D, max_len = 8, 4, 32, 64
    key = jax.random.PRNGKey(0)
    x = jax.random.normal(key, (S, B, D), dtype=jnp.float32)
    pe = make_positional_encoding(D, max_len)
    ref = x + pe[:S]

    out_eval = jax.block_until_ready(
        positional_encoding_forward(x, pe, p=dropout_p, training=False))
    assert out_eval.shape == (S, B, D)
    assert jnp.allclose(out_eval, ref, atol=1e-6, rtol=1e-6), "eval-mode mismatch"

    out_train = jax.block_until_ready(
        positional_encoding_forward(x, pe, p=dropout_p, training=True, seed=1234))
    assert out_train.shape == (S, B, D)
    scaled = ref / (1.0 - dropout_p)
    is_zero = jnp.isclose(out_train, 0.0, atol=1e-6)
    is_scaled = jnp.isclose(out_train, scaled, atol=1e-5, rtol=1e-5)
    assert bool(jnp.all(is_zero | is_scaled)), "dropout output not in {0, y/(1-p)}"
    drop_frac = float(jnp.mean(is_zero.astype(jnp.float32)))
    assert 0.02 < drop_frac < 0.30, f"dropout rate looks wrong: {drop_frac}"

    # ---- Config 2: d_model % 128 == 0 -> 3-D [S, B, D] path -----------------
    S2, B2, D2, max_len2 = 16, 2, 128, 32
    x2 = jax.random.normal(jax.random.PRNGKey(1), (S2, B2, D2), dtype=jnp.float32)
    pe2 = make_positional_encoding(D2, max_len2)
    ref2 = x2 + pe2[:S2]

    out2_eval = jax.block_until_ready(
        positional_encoding_forward(x2, pe2, p=dropout_p, training=False))
    assert jnp.allclose(out2_eval, ref2, atol=1e-6, rtol=1e-6), "eval mismatch (3D path)"

    out2_train = jax.block_until_ready(
        positional_encoding_forward(x2, pe2, p=dropout_p, training=True, seed=7))
    scaled2 = ref2 / (1.0 - dropout_p)
    ok2 = (jnp.isclose(out2_train, 0.0, atol=1e-6)
           | jnp.isclose(out2_train, scaled2, atol=1e-5, rtol=1e-5))
    assert bool(jnp.all(ok2)), "dropout output not in {0, y/(1-p)} (3D path)"
    drop_frac2 = float(jnp.mean(jnp.isclose(out2_train, 0.0, atol=1e-6).astype(jnp.float32)))
    assert 0.02 < drop_frac2 < 0.30, f"dropout rate looks wrong (3D path): {drop_frac2}"

    print("KERNEL_OK")
</pallas_src>

<mosaic_0001>
module attributes {stable_mosaic.version = 11 : i64} {
  func.func @_pe_add_kernel(%arg0: i32, %arg1: memref<8x128xf32, #tpu.memory_space<vmem>>, %arg2: memref<8x32xf32, #tpu.memory_space<vmem>>, %arg3: memref<8x128xf32, #tpu.memory_space<vmem>>) attributes {dimension_semantics = [#tpu.dimension_semantics<parallel>], iteration_bounds = array<i64: 1>, scalar_prefetch = 0 : i64, scratch_operands = 0 : i64, tpu.core_type = #tpu.core_type<tc>, window_params = [{transform_indices = @transform_0, window_bounds = array<i64: 8, 128>}, {pipeline_mode = #tpu.pipeline_mode<synchronous>, transform_indices = @transform_1, window_bounds = array<i64: 8, 32>}, {transform_indices = @transform_2, window_bounds = array<i64: 8, 128>}]} {
    %c0 = arith.constant 0 : index
    %c0_0 = arith.constant 0 : index
    %0 = vector.load %arg1[%c0, %c0_0] : memref<8x128xf32, #tpu.memory_space<vmem>>, vector<8x128xf32>
    %c8_i32 = arith.constant 8 : i32
    %1 = arith.muli %arg0, %c8_i32 : i32
    %2 = tpu.assume_multiple %1, 8 : i32
    %3 = arith.index_cast %2 : i32 to index
    %c0_1 = arith.constant 0 : index
    %4 = vector.load %arg2[%3, %c0_1] : memref<8x32xf32, #tpu.memory_space<vmem>>, vector<8x32xf32>
    %5 = tpu.concatenate %4, %4, %4, %4 in 1 : vector<8x32xf32>, vector<8x32xf32>, vector<8x32xf32>, vector<8x32xf32> -> vector<8x128xf32>
    %6 = arith.addf %0, %5 : vector<8x128xf32>
    %c0_2 = arith.constant 0 : index
    %c0_3 = arith.constant 0 : index
    %7 = vector.load %arg3[%c0_2, %c0_3] : memref<8x128xf32, #tpu.memory_space<vmem>>, vector<8x128xf32>
    tpu.vector_store %arg3[%c0_2, %c0_3], %6 {strides = array<i32>} : memref<8x128xf32, #tpu.memory_space<vmem>>, vector<8x128xf32>,
    return
  }
  func.func @transform_0(%arg0: i32) -> (i32, i32) {
    %c0_i32 = arith.constant 0 : i32
    %c0_i32_0 = arith.constant 0 : i32
    return %arg0, %c0_i32 : i32, i32
  }
  func.func @transform_1(%arg0: i32) -> (i32, i32) {
    %c0_i32 = arith.constant 0 : i32
    %c0_i32_0 = arith.constant 0 : i32
    %c0_i32_1 = arith.constant 0 : i32
    return %c0_i32, %c0_i32_0 : i32, i32
  }
  func.func @transform_2(%arg0: i32) -> (i32, i32) {
    %c0_i32 = arith.constant 0 : i32
    %c0_i32_0 = arith.constant 0 : i32
    return %arg0, %c0_i32 : i32, i32
  }
}

</mosaic_0001>

<bundles_post_ra>
// kernel: tpu_custom_call.1
= control target key start
LH: loop header
LB: loop body
LE: loop exit
PB: predicated region body
PF: predicated region fallthrough
CT: control target
= control target key end

     0   :  { %7 = vsyncpa [#allocation3], 0  ;;  %s176_s0 = inlined_call_operand.hbm [shape: f32[8,128], index: 0, kind: input, shape index: {}]   ;;  %s177_s1 = inlined_call_operand.hbm [shape: f32[8,32], index: 1, kind: input, shape index: {}]   ;;  %s178_s2 = inlined_call_operand.hbm [shape: f32[8,128], index: 2, kind: output, shape index: {}]  }
   0x1   :  { %8 = vsyncpa [#allocation6], 0 }
   0x2   :  { %9 = vsyncpa [#allocation4], 0  ;;  %s146_s9 = smov [#allocation2]   ;;  %s147_s11 = smov [#allocation5]  }
   0x3   :  { %s16_s10 = sshll.u32 %s146_s9, 4  ;;  %s26_s12 = sshll.u32 %s147_s11, 4  ;;  %s17_s10 = int_to_ptr.vmem [resolvable:$true] %s16_s10  ;;  %s27_s12 = int_to_ptr.vmem [resolvable:$true] %s26_s12 }
   0x4   :  { %s88_s13 = scalar_lea.vmem %s17_s10, 128  ;;  %p93_p1 = scmp.lt.s32.totalorder %s17_s10, %s17_s10 }
   0x5   :  { %p89_p0 = scmp.ne.s32.totalorder %s17_s10, %s88_s13  ;;  %p94_p2 = scmp.lt.s32.totalorder %s88_s13, %s88_s13 }
   0x7   :  { %p95_p3 = por %p94_p2, %p93_p1 }
   0x9   :  { %p96_p4 = pnand %p95_p3, %p89_p0 }
   0xb   :  { %99 = shalt.err (!%p96_p4)
}
   0xc   :  { %19 = dma.hbm_to_vmem [thread:$0]  %s176_s0, 128, %s17_s10, [#allocation3]  }
   0xd   :  { %s108_s16 = scalar_lea.vmem %s27_s12, 128  ;;  %p113_p6 = scmp.lt.s32.totalorder %s27_s12, %s27_s12 }
   0xe   :  { %p109_p5 = scmp.ne.s32.totalorder %s27_s12, %s108_s16  ;;  %p114_p7 = scmp.lt.s32.totalorder %s108_s16, %s108_s16 }
  0x10   :  { %p115_p8 = por %p114_p7, %p113_p6 }
  0x12   :  { %p116_p9 = pnand %p115_p8, %p109_p5 }
  0x14   :  { %119 = shalt.err (!%p116_p9)
}
  0x15   :  { %29 = dma.hbm_to_vmem [thread:$0]  %s177_s1, 128, %s27_s12, [#allocation6]  }
  0x16   :  { %140 = dma.done.wait [#allocation3], 128  }
  0x17   :  { %141 = vsyncadd [#allocation3], 4294967168 }
  0x18   :  { %142 = dma.done.wait [#allocation6], 128  }
  0x19   :  { %143 = vsyncadd [#allocation6], 4294967168  ;;  %v39_v0 = vld [vmem:[#allocation5] sm:$0xff]  ;;  %s148_s19 = smov 32   ;;  %s149_s20 = smov 96   ;;  %vm50_vm0 = vcmask 261120  }
  0x1a   :  { %41 = vrot.lane.b32.xlu0 %v39_v0, %s148_s19  ;;  %47 = vrot.lane.b32.xlu1 %v39_v0, %s149_s20  ;;  %s150_s0 = smov 64   ;;  %vm52_vm1 = vcmask 523264   ;;  %vm54_vm2 = vcmask 785408   ;;  %v36_v5 = vld [vmem:[#allocation2] sm:$0xff]  ;;  %s151_s1 = smov [#allocation7]  }
  0x1b   :  { %s64_s21 = sshll.u32 %s151_s1, 4  ;;  %s65_s21 = int_to_ptr.vmem [resolvable:$true] %s64_s21 }
  0x1c   :  { %s120_s22 = scalar_lea.vmem %s65_s21, 128  ;;  %p125_p11 = scmp.lt.s32.totalorder %s65_s21, %s65_s21 }
  0x1d   :  { %p121_p10 = scmp.ne.s32.totalorder %s65_s21, %s120_s22  ;;  %p126_p12 = scmp.lt.s32.totalorder %s120_s22, %s120_s22 }
  0x1e   :  { %44 = vrot.lane.b32.xlu0 %v39_v0, %s150_s0 }
  0x1f   :  { %p127_p13 = por %p126_p12, %p125_p11 }
  0x21   :  { %p128_p0 = pnand %p127_p13, %p121_p10 }
  0x8c   :  { %v42_v1 = vpop.permute.xlu0 %41  ;;  %v48_v2 = vpop.permute.xlu1 %47 }
  0x8d   :  { %v51_v3 = vsel %vm50_vm0, %v39_v0, %v42_v1 }
  0x90   :  { %v45_v4 = vpop.permute.xlu0 %44 }
  0x91   :  { %v53_v6 = vsel %vm52_vm1, %v51_v3, %v45_v4 }
  0x92   :  { %v55_v7 = vsel %vm54_vm2, %v53_v6, %v48_v2 }
  0x93   :  { %v56_v8 = vadd.f32 %v55_v7, %v36_v5 }
  0x95   :  { %57 = vst [vmem:[#allocation7] sm:$0xff] %v56_v8 }
  0x96   :  { %131 = shalt.err (!%p128_p0)
}
  0x97   :  { %67 = dma.vmem_to_hbm [thread:$0]  %s65_s21, 128, %s178_s2, [#allocation4]  }
  0x98   :  { %144 = dma.done.wait [#allocation4], 128  }
  0x99   :  { %145 = vsyncadd [#allocation4], 4294967168 }
  0x9a   :  { %71 = vsyncpa [#allocation3], 1 }
  0x9b   :  { %72 = vsyncpa [#allocation6], 1 }
  0x9c   :  { %73 = vsyncpa [#allocation4], 1 }

</bundles_post_ra>
